<compile_context>
chip_gen: v6e
topology: v6e:2x2x1
jax: 0.10.0
libtpu: 0.0.40
codegen_flags: <defaults>
</compile_context>

<pallas_src>
import numpy as np
import jax
import jax.numpy as jnp
from jax.experimental import pallas as pl
from jax.experimental.pallas import tpu as pltpu

_LANE = 128
# Beyond these sizes the "both dims pooled" case switches to an exact separable
# two-pass (pool width, then pool height): keeps the constant pooling matrix /
# mask operand small and the number of max reductions O(OH + OW).
_MAX_POOL_CONST_ELEMS = 1 << 20       # 4 MiB of f32 constants
_MAX_POOL_MASK_OUTPUTS = 32


# ---------------------------------------------------------------------------
# helpers (plain numpy / sizing glue)
# ---------------------------------------------------------------------------
def _normalize_output_sizes(output_sizes, H, W):
    if isinstance(output_sizes, int):
        return output_sizes, output_sizes
    oh, ow = output_sizes
    return (H if oh is None else int(oh)), (W if ow is None else int(ow))


def _window_bounds(in_size, out_size):
    # PyTorch adaptive pooling windows: [floor(i*I/O), ceil((i+1)*I/O))
    return [
        ((i * in_size) // out_size, -((-(i + 1) * in_size) // out_size))
        for i in range(out_size)
    ]


def _avg_pool_matrix_np(in_size, out_size):
    # Lane-dense orientation: (outputs, inputs)
    m = np.zeros((out_size, in_size), dtype=np.float32)
    for i, (a, b) in enumerate(_window_bounds(in_size, out_size)):
        m[i, a:b] = 1.0 / float(b - a)
    return m


def _max_pool_masks_np(H, W, OH, OW):
    # Lane-dense orientation: (outputs, H*W) {0,1} window masks
    m = np.zeros((OH * OW, H * W), dtype=np.float32)
    for q, (h0, h1) in enumerate(_window_bounds(H, OH)):
        for o, (w0, w1) in enumerate(_window_bounds(W, OW)):
            m[q * OW + o].reshape(H, W)[h0:h1, w0:w1] = 1.0
    return m


def _tpu_vmem_capacity():
    try:
        return int(pltpu.get_tpu_info().vmem_capacity_bytes)
    except Exception:
        return 64 << 20          # conservative default = v7x per-TensorCore VMEM


def _pad_up(n, mult):
    return -(-int(n) // int(mult)) * int(mult)


def _sublane_multiple(dtype):
    return 8 * max(1, 4 // jnp.dtype(dtype).itemsize)


def _padded_tile_bytes(shape, dtype):
    """VMEM bytes of one buffer after (sublane, lane) padding of the last 2 dims."""
    shape = tuple(int(s) for s in shape)
    item = jnp.dtype(dtype).itemsize
    lead = 1
    for s in shape[:-2]:
        lead *= s
    sl = _pad_up(shape[-2], _sublane_multiple(dtype))
    ln = _pad_up(shape[-1], _LANE)
    return lead * sl * ln * item


def _choose_row_block(total_rows, per_row_bytes, budget_bytes, min_steps=4):
    """Rows per grid step: a multiple of 8, sized so the whole row-proportional
    VMEM working set fits budget_bytes, and capped so the 1-D grid has at least
    min_steps steps (>= 2 x TensorCores on v7x, plus DMA/compute overlap)."""
    total_rows = int(total_rows)
    if total_rows <= 8:
        return max(1, total_rows)
    by_budget = max(8, (int(budget_bytes) // max(int(per_row_bytes), 1)) // 8 * 8)
    by_steps = max(8, (total_rows // min_steps) // 8 * 8)
    return min(by_budget, by_steps)


def _working_budget(vmem_cap, const_bytes):
    # Row-proportional buffers get ~40% of physical VMEM (double-buffered in +
    # out + compute temps), leaving room for constants and compiler scratch.
    return max(4 << 20, (int(vmem_cap) * 2) // 5 - int(const_bytes))


def _vmem_limit(est_bytes, vmem_cap):
    # Explicit scoped-VMEM limit with headroom, capped at 3/4 of physical VMEM
    # (48 MiB on v7x, 96 MiB on v5e/v6e so big images are not spuriously rejected).
    hi = (int(vmem_cap) * 3) // 4
    want = int(est_bytes) + (int(est_bytes) >> 2) + (8 << 20)
    return int(min(hi, max(32 << 20, want)))


def _const_block_spec(shape):
    """BlockSpec for a grid-invariant operand (same block every step);
    single-buffered when the running jax supports pipeline_mode."""
    try:
        return pl.BlockSpec(shape, lambda i: (0, 0), pipeline_mode=pl.Buffered(1))
    except Exception:            # older jax: fall back to default double-buffering
        return pl.BlockSpec(shape, lambda i: (0, 0))


# ---------------------------------------------------------------------------
# Pallas kernels
# ---------------------------------------------------------------------------
def _avg_flat_kernel(x_ref, p_ref, o_ref):
    # x_ref: (Rb, L)   p_ref: (M, L) f32, lane-dense   o_ref: (Rb, M)
    # One MXU matmul contracting on the lane axis of both operands; the input
    # tile is upcast in-kernel (VPU, free in this memory-bound kernel) so
    # bf16/int inputs never need a wrapper-side HBM cast.
    x = x_ref[...].astype(jnp.float32)
    acc = jax.lax.dot_general(
        x, p_ref[...],
        dimension_numbers=(((1,), (1,)), ((), ())),
        preferred_element_type=jnp.float32,
    )
    o_ref[...] = acc.astype(o_ref.dtype)


def _max_flat_kernel(x_ref, m_ref, o_ref):
    # x_ref: (Rb, L)   m_ref: (M, L) f32 {0,1} window masks   o_ref: (Rb, M)
    # Per output position: masked full-lane max reduction on a lane-dense tile
    # (no narrow (.., H, W) tiles, no lane-slice / concat chains).
    x = x_ref[...]
    if jnp.issubdtype(x_ref.dtype, jnp.floating):
        fill = jnp.asarray(-jnp.inf, dtype=x_ref.dtype)
    else:
        fill = jnp.asarray(jnp.iinfo(x_ref.dtype).min, dtype=x_ref.dtype)
    num_out = o_ref.shape[-1]
    cols = []
    for j in range(num_out):
        mask = m_ref[j:j + 1, :] > 0.0                       # (1, L), static slice
        cols.append(jnp.max(jnp.where(mask, x, fill), axis=1, keepdims=True))
    o_ref[...] = jnp.concatenate(cols, axis=1).astype(o_ref.dtype)


def _make_height_pool_kernel(hb, op):
    # x_ref: (Rb, H, W) -> o_ref: (Rb, OH, W); width stays on the lane axis.
    # This path is only used when the width is kept (OW == W), i.e. typically
    # the wide image axis, so the lane dim is naturally dense.
    def kernel(x_ref, o_ref):
        x = x_ref[...]
        outs = []
        for a, b in hb:
            win = x[:, a:b, :]
            if op == "max":
                outs.append(jnp.max(win, axis=1, keepdims=True))
            else:
                s = jnp.sum(win.astype(jnp.float32), axis=1, keepdims=True)
                outs.append(s * (1.0 / float(b - a)))
        o_ref[...] = jnp.concatenate(outs, axis=1).astype(o_ref.dtype)

    return kernel


# ---------------------------------------------------------------------------
# pallas_call wrappers
# ---------------------------------------------------------------------------
def _flat_pool_call(kernel, x2, const, num_out, out_dtype, tmp_row_bytes):
    rows, L = x2.shape
    vmem_cap = _tpu_vmem_capacity()
    const_bytes = 2 * _padded_tile_bytes(const.shape, const.dtype)
    per_row = (2 * _pad_up(L, _LANE) * jnp.dtype(x2.dtype).itemsize
               + 2 * _pad_up(num_out, _LANE) * jnp.dtype(out_dtype).itemsize
               + int(tmp_row_bytes))
    rb = _choose_row_block(rows, per_row, _working_budget(vmem_cap, const_bytes))
    est = rb * per_row + const_bytes
    return pl.pallas_call(
        kernel,
        out_shape=jax.ShapeDtypeStruct((rows, num_out), out_dtype),
        grid=(pl.cdiv(rows, rb),),
        in_specs=[
            pl.BlockSpec((rb, L), lambda i: (i, 0)),
            _const_block_spec((int(const.shape[0]), int(const.shape[1]))),
        ],
        out_specs=pl.BlockSpec((rb, num_out), lambda i: (i, 0)),
        compiler_params=pltpu.CompilerParams(
            dimension_semantics=("parallel",),
            vmem_limit_bytes=_vmem_limit(est, vmem_cap),
        ),
    )(x2, const)


def _height_pool_call(x, OH, op):
    # Pool the height only (OW == W): keep the (typically wide) W axis on lanes.
    N, C, H, W = x.shape
    rows = N * C
    hb = _window_bounds(H, OH)
    x3 = x.reshape(rows, H, W)
    vmem_cap = _tpu_vmem_capacity()
    item = jnp.dtype(x.dtype).itemsize
    sm = _sublane_multiple(x.dtype)
    lane_w = _pad_up(W, _LANE)
    in_row = _pad_up(H, sm) * lane_w * item
    out_row = _pad_up(OH, sm) * lane_w * item
    tmp_row = _pad_up(H, 8) * lane_w * 4 if op == "avg" else in_row
    per_row = 2 * in_row + 2 * out_row + tmp_row
    rb = _choose_row_block(rows, per_row, _working_budget(vmem_cap, 0))
    est = rb * per_row
    out3 = pl.pallas_call(
        _make_height_pool_kernel(hb, op),
        out_shape=jax.ShapeDtypeStruct((rows, OH, W), x.dtype),
        grid=(pl.cdiv(rows, rb),),
        in_specs=[pl.BlockSpec((rb, H, W), lambda i: (i, 0, 0))],
        out_specs=pl.BlockSpec((rb, OH, W), lambda i: (i, 0, 0)),
        compiler_params=pltpu.CompilerParams(
            dimension_semantics=("parallel",),
            vmem_limit_bytes=_vmem_limit(est, vmem_cap),
        ),
    )(x3)
    return out3.reshape(N, C, OH, W)


# ---------------------------------------------------------------------------
# func implementations (the `self._func(batch_input=..., ...)` callables)
# ---------------------------------------------------------------------------
def adaptive_avgpool_2d(batch_input, output_sizes, batch_sizes=None):
    # TODO(synk): batch_sizes / PaddedTensor ragged pooling path not implemented
    # (padded regions are included in the pooling windows).
    N, C, H, W = batch_input.shape
    OH, OW = _normalize_output_sizes(output_sizes, H, W)
    if OH == H and OW == W:
        return batch_input
    if OW == W:                                   # keep width: pool height only
        return _height_pool_call(batch_input, OH, op="avg")
    if OH < H and OH * OW * H * W > _MAX_POOL_CONST_ELEMS:
        # Exact separable two-pass (column windows are identical for every row
        # window), keeps the kron pooling matrix small for huge feature maps.
        y = adaptive_avgpool_2d(batch_input, (None, OW), batch_sizes)
        return adaptive_avgpool_2d(y, (OH, None), batch_sizes)
    if OH == H:                                   # keep height: fold H into rows
        rows, L, M = N * C * H, W, OW
        pool_np = _avg_pool_matrix_np(W, OW)                          # (OW, W)
        out_shape4 = (N, C, H, OW)
    else:
        rows, L, M = N * C, H * W, OH * OW
        pool_np = np.kron(_avg_pool_matrix_np(H, OH),
                          _avg_pool_matrix_np(W, OW))                 # (OH*OW, H*W)
        out_shape4 = (N, C, OH, OW)
    # Pooling weights stay f32; the input tile is upcast inside the kernel.
    # TODO(synk): integer inputs are averaged in f32 and truncated back
    # (PyTorch has no integer adaptive_avg_pool2d to match).
    pool = jnp.asarray(pool_np, dtype=jnp.float32)
    x2 = batch_input.reshape(rows, L)
    out2 = _flat_pool_call(
        _avg_flat_kernel, x2, pool, M, batch_input.dtype,
        tmp_row_bytes=_pad_up(L, _LANE) * 4,      # in-kernel f32 upcast of the tile
    )
    return out2.reshape(out_shape4)


def adaptive_maxpool_2d(batch_input, output_sizes, batch_sizes=None):
    # TODO(synk): batch_sizes / PaddedTensor ragged pooling path not implemented
    # (padded regions are included in the pooling windows).
    N, C, H, W = batch_input.shape
    OH, OW = _normalize_output_sizes(output_sizes, H, W)
    if OH == H and OW == W:
        return batch_input
    if OW == W:                                   # keep width: pool height only
        return _height_pool_call(batch_input, OH, op="max")
    if OH < H and (OH * OW > _MAX_POOL_MASK_OUTPUTS
                   or OH * OW * H * W > _MAX_POOL_CONST_ELEMS):
        # Exact separable two-pass: O(OH + OW) reductions instead of O(OH*OW).
        y = adaptive_maxpool_2d(batch_input, (None, OW), batch_sizes)
        return adaptive_maxpool_2d(y, (OH, None), batch_sizes)
    if OH == H:                                   # keep height: fold H into rows
        rows, L, M = N * C * H, W, OW
        masks_np = _max_pool_masks_np(1, W, 1, OW)                    # (OW, W)
        out_shape4 = (N, C, H, OW)
    else:
        rows, L, M = N * C, H * W, OH * OW
        masks_np = _max_pool_masks_np(H, W, OH, OW)                   # (OH*OW, H*W)
        out_shape4 = (N, C, OH, OW)
    masks = jnp.asarray(masks_np, dtype=jnp.float32)
    x2 = batch_input.reshape(rows, L)
    out2 = _flat_pool_call(
        _max_flat_kernel, x2, masks, M, batch_input.dtype,
        tmp_row_bytes=_pad_up(L, _LANE) * jnp.dtype(batch_input.dtype).itemsize,
    )
    return out2.reshape(out_shape4)


# ---------------------------------------------------------------------------
# Module wrapper (mirrors laia.nn.AdaptivePool2d.forward for plain tensors)
# ---------------------------------------------------------------------------
class AdaptivePool2d:
    def __init__(self, output_sizes, func):
        self._output_sizes = output_sizes
        self._func = func
        self._fixed_size = isinstance(output_sizes, int) or (
            output_sizes[0] is not None and output_sizes[1] is not None
        )

    @property
    def output_sizes(self):
        return self._output_sizes

    def __call__(self, x, xs=None):
        y = self._func(batch_input=x, output_sizes=self._output_sizes, batch_sizes=xs)
        if xs is None or self._fixed_size:
            return y
        # TODO(synk): PaddedTensor.build / per-sample size bookkeeping not implemented.
        return y


# ---------------------------------------------------------------------------
# reference (numpy) for validation
# ---------------------------------------------------------------------------
def _ref_adaptive_pool(x, output_sizes, op):
    x = np.asarray(x, dtype=np.float32)
    N, C, H, W = x.shape
    OH, OW = _normalize_output_sizes(output_sizes, H, W)
    out = np.zeros((N, C, OH, OW), dtype=np.float32)
    for i, (h0, h1) in enumerate(_window_bounds(H, OH)):
        for j, (w0, w1) in enumerate(_window_bounds(W, OW)):
            win = x[:, :, h0:h1, w0:w1]
            out[:, :, i, j] = win.mean(axis=(2, 3)) if op == "avg" else win.max(axis=(2, 3))
    return out


if __name__ == "__main__":
    key = jax.random.PRNGKey(0)
    x = jax.random.normal(key, (2, 4, 16, 16), dtype=jnp.float32)

    checks = [
        ((4, 4), adaptive_avgpool_2d, "avg"),       # divisible windows
        ((3, 5), adaptive_avgpool_2d, "avg"),       # overlapping adaptive windows
        ((None, 4), adaptive_avgpool_2d, "avg"),    # keep-H (width-only, folded rows)
        ((4, None), adaptive_avgpool_2d, "avg"),    # keep-W (height-only path)
        ((4, 4), adaptive_maxpool_2d, "max"),       # divisible windows
        ((3, 5), adaptive_maxpool_2d, "max"),       # overlapping adaptive windows
        ((None, 4), adaptive_maxpool_2d, "max"),    # keep-H path
        ((4, None), adaptive_maxpool_2d, "max"),    # keep-W path
        ((6, 6), adaptive_maxpool_2d, "max"),       # separable two-pass path
    ]
    for sizes, fn, op in checks:
        pool = AdaptivePool2d(sizes, fn)
        y = jax.block_until_ready(pool(x))
        ref = _ref_adaptive_pool(x, sizes, op)
        np.testing.assert_allclose(np.asarray(y), ref, rtol=1e-5, atol=1e-5)

    # Low-precision input: pooling weights stay f32, accumulation f32, output bf16.
    xb = x.astype(jnp.bfloat16)
    yb = jax.block_until_ready(AdaptivePool2d((3, 5), adaptive_avgpool_2d)(xb))
    refb = _ref_adaptive_pool(np.asarray(xb).astype(np.float32), (3, 5), "avg")
    np.testing.assert_allclose(np.asarray(yb).astype(np.float32), refb,
                               rtol=2e-2, atol=2e-2)

    print("KERNEL_OK")
</pallas_src>

<mosaic_0001>
module attributes {stable_mosaic.version = 11 : i64} {
  func.func @_avg_flat_kernel(%arg0: i32, %arg1: memref<8x256xf32, #tpu.memory_space<vmem>>, %arg2: memref<16x256xf32, #tpu.memory_space<vmem>>, %arg3: memref<8x16xf32, #tpu.memory_space<vmem>>) attributes {dimension_semantics = [#tpu.dimension_semantics<parallel>], iteration_bounds = array<i64: 1>, scalar_prefetch = 0 : i64, scratch_operands = 0 : i64, tpu.core_type = #tpu.core_type<tc>, window_params = [{transform_indices = @transform_0, window_bounds = array<i64: 8, 256>}, {pipeline_mode = #tpu.pipeline_mode<synchronous>, transform_indices = @transform_1, window_bounds = array<i64: 16, 256>}, {transform_indices = @transform_2, window_bounds = array<i64: 8, 16>}]} {
    %c0 = arith.constant 0 : index
    %c0_0 = arith.constant 0 : index
    %0 = vector.load %arg1[%c0, %c0_0] : memref<8x256xf32, #tpu.memory_space<vmem>>, vector<8x256xf32>
    %c0_1 = arith.constant 0 : index
    %c0_2 = arith.constant 0 : index
    %1 = vector.load %arg2[%c0_1, %c0_2] : memref<16x256xf32, #tpu.memory_space<vmem>>, vector<16x256xf32>
    %cst = arith.constant dense<0.000000e+00> : vector<8x16xf32>
    %2 = tpu.matmul %0, %1, %cst {dimension_numbers = #tpu.dot_dimension_numbers<[1], [1], [0], [0], [0, 0, 1, 0], [], []>} : vector<8x256xf32>, vector<16x256xf32>, vector<8x16xf32> -> vector<8x16xf32>
    %c0_3 = arith.constant 0 : index
    %c0_4 = arith.constant 0 : index
    %3 = vector.load %arg3[%c0_3, %c0_4] : memref<8x16xf32, #tpu.memory_space<vmem>>, vector<8x16xf32>
    tpu.vector_store %arg3[%c0_3, %c0_4], %2 {strides = array<i32>} : memref<8x16xf32, #tpu.memory_space<vmem>>, vector<8x16xf32>,
    return
  }
  func.func @transform_0(%arg0: i32) -> (i32, i32) {
    %c0_i32 = arith.constant 0 : i32
    %c0_i32_0 = arith.constant 0 : i32
    return %arg0, %c0_i32 : i32, i32
  }
  func.func @transform_1(%arg0: i32) -> (i32, i32) {
    %c0_i32 = arith.constant 0 : i32
    %c0_i32_0 = arith.constant 0 : i32
    %c0_i32_1 = arith.constant 0 : i32
    return %c0_i32, %c0_i32_0 : i32, i32
  }
  func.func @transform_2(%arg0: i32) -> (i32, i32) {
    %c0_i32 = arith.constant 0 : i32
    %c0_i32_0 = arith.constant 0 : i32
    return %arg0, %c0_i32 : i32, i32
  }
}

</mosaic_0001>

<bundles_post_ra>
// kernel: tpu_custom_call.1
= control target key start
LH: loop header
LB: loop body
LE: loop exit
PB: predicated region body
PF: predicated region fallthrough
CT: control target
= control target key end

     0   :  { %7 = vsyncpa [#allocation3], 0  ;;  %s232_s0 = inlined_call_operand.hbm [shape: f32[8,256], index: 0, kind: input, shape index: {}]   ;;  %s233_s1 = inlined_call_operand.hbm [shape: f32[16,256], index: 1, kind: input, shape index: {}]   ;;  %s234_s2 = inlined_call_operand.hbm [shape: f32[8,16], index: 2, kind: output, shape index: {}]  }
   0x1   :  { %8 = vsyncpa [#allocation6], 0 }
   0x2   :  { %9 = vsyncpa [#allocation4], 0  ;;  %s203_s9 = smov [#allocation2]   ;;  %s204_s11 = smov [#allocation5]  }
   0x3   :  { %s16_s10 = sshll.u32 %s203_s9, 4  ;;  %s25_s12 = sshll.u32 %s204_s11, 4  ;;  %s17_s10 = int_to_ptr.vmem [resolvable:$true] %s16_s10  ;;  %s26_s12 = int_to_ptr.vmem [resolvable:$true] %s25_s12 }
   0x4   :  { %s145_s13 = scalar_lea.vmem %s17_s10, 256  ;;  %p150_p1 = scmp.lt.s32.totalorder %s17_s10, %s17_s10 }
   0x5   :  { %p146_p0 = scmp.ne.s32.totalorder %s17_s10, %s145_s13  ;;  %p151_p2 = scmp.lt.s32.totalorder %s145_s13, %s145_s13 }
   0x7   :  { %p152_p3 = por %p151_p2, %p150_p1 }
   0x9   :  { %p153_p4 = pnand %p152_p3, %p146_p0 }
   0xb   :  { %156 = shalt.err (!%p153_p4)
}
   0xc   :  { %19 = dma.hbm_to_vmem [thread:$0]  %s232_s0, 256, %s17_s10, [#allocation3]  }
   0xd   :  { %s165_s16 = scalar_lea.vmem %s26_s12, 512  ;;  %p170_p6 = scmp.lt.s32.totalorder %s26_s12, %s26_s12 }
   0xe   :  { %p166_p5 = scmp.ne.s32.totalorder %s26_s12, %s165_s16  ;;  %p171_p7 = scmp.lt.s32.totalorder %s165_s16, %s165_s16 }
  0x10   :  { %p172_p8 = por %p171_p7, %p170_p6 }
  0x12   :  { %p173_p9 = pnand %p172_p8, %p166_p5 }
  0x14   :  { %176 = shalt.err (!%p173_p9)
}
  0x15   :  { %s205_s17 = smov 256   ;;  %s206_s18 = smov 16  }
  0x16   :  { %31 = dma.hbm_to_vmem [thread:$0]  %s233_s1, 512, %s26_s12, [#allocation6], %s205_s17, %s205_s17, %s206_s18  }
  0x17   :  { %197 = dma.done.wait [#allocation3], 256  }
  0x18   :  { %198 = vsyncadd [#allocation3], 4294967040 }
  0x19   :  { %199 = dma.done.wait [#allocation6], 512  }
  0x1a   :  { %200 = vsyncadd [#allocation6], 4294966784  ;;  %v43_v0 = vld [vmem:[#allocation5 + $0x18] sm:$0xff]  ;;  %v42_v1 = vld [vmem:[#allocation5 + $0x10] sm:$0xff]  ;;  %s207_s0 = smov [#allocation7]   ;;  %vm114_vm0 = vcmask 130048  }
  0x1b   :  { %v41_v2 = vld [vmem:[#allocation5 + $0x8] sm:$0xff]  ;;  %72 = vmatprep.subr.mxu0 %v43_v0  ;;  %v39_v3 = vld [vmem:[#allocation2 + $0x8] sm:$0xff]  ;;  %v40_v4 = vld [vmem:[#allocation5] sm:$0xff]  ;;  %s122_s21 = sshll.u32 %s207_s0, 4  ;;  %s123_s21 = int_to_ptr.vmem [resolvable:$true] %s122_s21 }
  0x1c   :  { %73 = vmatpush1.xpose.msra.mxu0 %v42_v1  ;;  %108 = vmatprep.mubr.f32.mxu0 %v39_v3  ;;  %v38_v5 = vld [vmem:[#allocation2] sm:$0xff]  ;;  %s177_s1 = scalar_lea.vmem %s123_s21, 128  ;;  %p182_p11 = scmp.lt.s32.totalorder %s123_s21, %s123_s21 }
  0x1d   :  { %74 = vmatprep.subr.mxu0 %v41_v2  ;;  %p178_p10 = scmp.ne.s32.totalorder %s123_s21, %s177_s1  ;;  %p183_p12 = scmp.lt.s32.totalorder %s177_s1, %s177_s1 }
  0x1f   :  { %p184_p13 = por %p183_p12, %p182_p11 }
  0x20   :  { %75 = vmatpush1.xpose.msra.mxu0 %v40_v4 }
  0x21   :  { %p185_p0 = pnand %p184_p13, %p178_p10 }
  0x23   :  { %109 = vmatmul.mubr.f32.vlgmr.msra.gmra.mxu0 %v38_v5 }
  0xe3   :  { %v110_v6 = vpop.f32.mrf.mxu0 }
  0xe4   :  { %115 = vst.msk [vmem:[#allocation7] sm:$0xff] %vm114_vm0, %v110_v6 }
  0xe5   :  { %v112_v7 = vpop.f32.mrf.mxu0 }
  0xe6   :  { %188 = shalt.err (!%p185_p0)
}
  0xe7   :  { %125 = dma.vmem_to_hbm [thread:$0]  %s123_s21, 128, %s234_s2, [#allocation4]  }
  0xe8   :  { %201 = dma.done.wait [#allocation4], 128  }
  0xe9   :  { %202 = vsyncadd [#allocation4], 4294967168 }
  0xea   :  { %129 = vsyncpa [#allocation3], 1 }
  0xeb   :  { %130 = vsyncpa [#allocation6], 1 }
  0xec   :  { %131 = vsyncpa [#allocation4], 1 }

</bundles_post_ra>
